<compile_context>
chip_gen: v7x
topology: tpu7x:2x2x1
jax: 0.10.0
libtpu: 0.0.40
codegen_flags: <defaults>
</compile_context>

<pallas_src>
import jax
import jax.numpy as jnp
from jax.experimental import pallas as pl
from jax.experimental.pallas import tpu as pltpu

LN_EPS = 1e-5
_MiB = 1024 * 1024


# ----------------------------------------------------------------------------
# Stage 1: attention MLP.  Runs once (grid=(1,)), all operands resident in
# VMEM.  Row-oriented math so LayerNorm / softmax reduce along the lane axis.
# ----------------------------------------------------------------------------
def _attention_mlp_kernel(text_ref, w1_ref, b1_ref, gamma_ref, beta_ref,
                          w2_ref, b2_ref, attn_ref):
    x = text_ref[...]                                                  # (B, in)

    # Linear 1
    h = jnp.dot(x, w1_ref[...], preferred_element_type=jnp.float32) + b1_ref[...]

    # LayerNorm (biased variance, eps inside rsqrt) + affine — matches PyTorch.
    mean = jnp.mean(h, axis=-1, keepdims=True)
    var = jnp.mean((h - mean) * (h - mean), axis=-1, keepdims=True)
    h = (h - mean) * jax.lax.rsqrt(var + LN_EPS)
    h = h * gamma_ref[...] + beta_ref[...]

    # ReLU
    h = jnp.maximum(h, 0.0)

    # Linear 2 + numerically stable softmax over the channel dim.
    logits = jnp.dot(h, w2_ref[...], preferred_element_type=jnp.float32) + b2_ref[...]
    m = jnp.max(logits, axis=-1, keepdims=True)
    e = jnp.exp(logits - m)
    attn_ref[...] = e / jnp.sum(e, axis=-1, keepdims=True)             # (B, C)


def _attention_mlp(text, params):
    B, in_dim = text.shape
    mid_dim = params["w1"].shape[1]
    C = params["w2"].shape[1]
    full = lambda i: (0, 0)
    return pl.pallas_call(
        _attention_mlp_kernel,
        out_shape=jax.ShapeDtypeStruct((B, C), jnp.float32),
        grid=(1,),
        in_specs=[
            pl.BlockSpec((B, in_dim), full),        # text
            pl.BlockSpec((in_dim, mid_dim), full),  # w1
            pl.BlockSpec((1, mid_dim), full),       # b1
            pl.BlockSpec((1, mid_dim), full),       # gamma
            pl.BlockSpec((1, mid_dim), full),       # beta
            pl.BlockSpec((mid_dim, C), full),       # w2
            pl.BlockSpec((1, C), full),             # b2
        ],
        out_specs=pl.BlockSpec((B, C), full),
    )(text, params["w1"], params["b1"], params["gamma"], params["beta"],
      params["w2"], params["b2"])


# ----------------------------------------------------------------------------
# Stage 2: bandwidth-bound broadcast multiply over the flattened image.
# Block = (row_tile, hw_tile); scale block = (row_tile, 1) lane-broadcast.
# ----------------------------------------------------------------------------
def _scale_kernel(attn_ref, img_ref, out_ref):
    out_ref[...] = (img_ref[...] * attn_ref[...]).astype(out_ref.dtype)


def _vmem_capacity_bytes():
    try:
        return int(pltpu.get_tpu_info().vmem_capacity_bytes)
    except Exception:
        return 64 * _MiB          # conservative default (v7x per-TC VMEM)


def _pick_tiles(rows, hw, budget_bytes, dtype_bytes=4):
    """Pick (row_tile, hw_tile) for the streaming multiply.

    Working set = 2 x input tile + 2 x output tile (double-buffered).  Prefer
    hw_tile == hw so every block is one contiguous HBM slab; otherwise tile
    the spatial axis in 128-lane multiples (tail block is masked by Pallas).
    row_tile is a multiple of 8 (or the full row count when rows < 8) so
    blocks stay (8,128)-dense even for small channel counts.
    """
    max_elems = max(1024, budget_bytes // (4 * dtype_bytes))
    tr_unit = 8 if rows >= 8 else rows
    if tr_unit * hw <= max_elems:
        tr = min(rows, max(tr_unit, (max_elems // hw) // tr_unit * tr_unit))
        thw = hw
    else:
        tr = tr_unit
        thw = min(hw, max(128, (max_elems // tr) // 128 * 128))
    return tr, thw


# ----------------------------------------------------------------------------
# Module forward
# ----------------------------------------------------------------------------
def sentence_attention_forward(image, text, params):
    B, C, H, W = image.shape
    rows, hw = B * C, H * W
    itemsize = jnp.dtype(image.dtype).itemsize

    # Stage 1: (B, C) attention, computed once, off the streaming critical
    # path.  Reshape to a (B*C, 1) column (tiny) matching the flattened image.
    attn_col = _attention_mlp(text, params).reshape(rows, 1)
    img2d = image.reshape(rows, hw)                      # layout-preserving

    # Per-generation VMEM policy: wide tiles on 128-MiB parts (v5e/v6e),
    # headroom-preserving tiles on 64-MiB parts (v7x).
    cap = _vmem_capacity_bytes()
    budget = 32 * _MiB if cap >= 96 * _MiB else 24 * _MiB
    vmem_limit = int(min(max(cap - 16 * _MiB, budget + 8 * _MiB), 96 * _MiB))

    tr, thw = _pick_tiles(rows, hw, budget, itemsize)

    # If the whole image fits one block, split the row axis so a 2-TC part
    # (v7x) keeps both cores busy; the extra grid step costs ~0.35 us on
    # single-TC parts, negligible for an image this small.
    if pl.cdiv(rows, tr) * pl.cdiv(hw, thw) == 1 and rows >= 16:
        tr = pl.cdiv(rows, 16) * 8

    grid = (pl.cdiv(rows, tr), pl.cdiv(hw, thw))

    out2d = pl.pallas_call(
        _scale_kernel,
        out_shape=jax.ShapeDtypeStruct((rows, hw), image.dtype),
        grid=grid,
        in_specs=[
            pl.BlockSpec((tr, 1), lambda i, j: (i, 0)),    # attention column
            pl.BlockSpec((tr, thw), lambda i, j: (i, j)),  # image tile
        ],
        out_specs=pl.BlockSpec((tr, thw), lambda i, j: (i, j)),
        compiler_params=pltpu.CompilerParams(
            dimension_semantics=("parallel", "parallel"),
            vmem_limit_bytes=vmem_limit),
    )(attn_col, img2d)
    return out2d.reshape(B, C, H, W)


def init_params(key, in_dim, out_dim):
    mid_dim = in_dim * 4
    k1, k2, k3, k4 = jax.random.split(key, 4)
    bound1 = 1.0 / jnp.sqrt(in_dim)
    bound2 = 1.0 / jnp.sqrt(mid_dim)
    return {
        "w1": jax.random.uniform(k1, (in_dim, mid_dim), jnp.float32, -bound1, bound1),
        "b1": jax.random.uniform(k2, (1, mid_dim), jnp.float32, -bound1, bound1),
        "gamma": jnp.ones((1, mid_dim), jnp.float32),
        "beta": jnp.zeros((1, mid_dim), jnp.float32),
        "w2": jax.random.uniform(k3, (mid_dim, out_dim), jnp.float32, -bound2, bound2),
        "b2": jax.random.uniform(k4, (1, out_dim), jnp.float32, -bound2, bound2),
    }


if __name__ == "__main__":
    B, in_dim, out_dim, H, W = 2, 32, 4, 16, 16

    key = jax.random.PRNGKey(0)
    k_img, k_txt, k_par = jax.random.split(key, 3)

    image = jax.random.normal(k_img, (B, out_dim, H, W), jnp.float32)  # NCHW
    text = jax.random.normal(k_txt, (B, in_dim), jnp.float32)
    params = init_params(k_par, in_dim, out_dim)

    out = sentence_attention_forward(image, text, params)
    jax.block_until_ready(out)

    # Reference check in plain JAX.
    h = text @ params["w1"] + params["b1"]
    mu = h.mean(-1, keepdims=True)
    var = ((h - mu) ** 2).mean(-1, keepdims=True)
    h = (h - mu) / jnp.sqrt(var + LN_EPS) * params["gamma"] + params["beta"]
    h = jnp.maximum(h, 0.0)
    attn_ref = jax.nn.softmax(h @ params["w2"] + params["b2"], axis=-1)
    ref = image * attn_ref[:, :, None, None]
    assert jnp.allclose(out, ref, atol=1e-5, rtol=1e-5), "mismatch vs reference"

    print("KERNEL_OK")
</pallas_src>

<mosaic_0001>
module attributes {stable_mosaic.version = 11 : i64} {
  func.func @_attention_mlp_kernel(%arg0: i32, %arg1: memref<2x32xf32, #tpu.memory_space<vmem>>, %arg2: memref<32x128xf32, #tpu.memory_space<vmem>>, %arg3: memref<1x128xf32, #tpu.memory_space<vmem>>, %arg4: memref<1x128xf32, #tpu.memory_space<vmem>>, %arg5: memref<1x128xf32, #tpu.memory_space<vmem>>, %arg6: memref<128x4xf32, #tpu.memory_space<vmem>>, %arg7: memref<1x4xf32, #tpu.memory_space<vmem>>, %arg8: memref<2x4xf32, #tpu.memory_space<vmem>>) attributes {dimension_semantics = [#tpu.dimension_semantics<arbitrary>], iteration_bounds = array<i64: 1>, scalar_prefetch = 0 : i64, scratch_operands = 0 : i64, tpu.core_type = #tpu.core_type<tc>, window_params = [{pipeline_mode = #tpu.pipeline_mode<synchronous>, transform_indices = @transform_0, window_bounds = array<i64: 2, 32>}, {pipeline_mode = #tpu.pipeline_mode<synchronous>, transform_indices = @transform_1, window_bounds = array<i64: 32, 128>}, {pipeline_mode = #tpu.pipeline_mode<synchronous>, transform_indices = @transform_2, window_bounds = array<i64: 1, 128>}, {pipeline_mode = #tpu.pipeline_mode<synchronous>, transform_indices = @transform_3, window_bounds = array<i64: 1, 128>}, {pipeline_mode = #tpu.pipeline_mode<synchronous>, transform_indices = @transform_4, window_bounds = array<i64: 1, 128>}, {pipeline_mode = #tpu.pipeline_mode<synchronous>, transform_indices = @transform_5, window_bounds = array<i64: 128, 4>}, {pipeline_mode = #tpu.pipeline_mode<synchronous>, transform_indices = @transform_6, window_bounds = array<i64: 1, 4>}, {pipeline_mode = #tpu.pipeline_mode<synchronous>, transform_indices = @transform_7, window_bounds = array<i64: 2, 4>}]} {
    %c0 = arith.constant 0 : index
    %c0_0 = arith.constant 0 : index
    %0 = vector.load %arg1[%c0, %c0_0] : memref<2x32xf32, #tpu.memory_space<vmem>>, vector<2x32xf32>
    %c0_1 = arith.constant 0 : index
    %c0_2 = arith.constant 0 : index
    %1 = vector.load %arg2[%c0_1, %c0_2] : memref<32x128xf32, #tpu.memory_space<vmem>>, vector<32x128xf32>
    %cst = arith.constant dense<0.000000e+00> : vector<2x128xf32>
    %2 = tpu.matmul %0, %1, %cst {dimension_numbers = #tpu.dot_dimension_numbers<[1], [0], [0], [1], [0, 0, 1, 1], [], []>} : vector<2x32xf32>, vector<32x128xf32>, vector<2x128xf32> -> vector<2x128xf32>
    %c0_3 = arith.constant 0 : index
    %c0_4 = arith.constant 0 : index
    %3 = vector.load %arg3[%c0_3, %c0_4] : memref<1x128xf32, #tpu.memory_space<vmem>>, vector<1x128xf32>
    %4 = vector.broadcast %3 : vector<1x128xf32> to vector<2x128xf32>
    %5 = arith.addf %2, %4 : vector<2x128xf32>
    %cst_5 = arith.constant dense<0.000000e+00> : vector<2xf32>
    %6 = vector.multi_reduction <add>, %5, %cst_5 [1] : vector<2x128xf32> to vector<2xf32>
    %7 = vector.shape_cast %6 : vector<2xf32> to vector<2x1xf32>
    %cst_6 = arith.constant 1.280000e+02 : f32
    %8 = vector.broadcast %cst_6 : f32 to vector<2x1xf32>
    %9 = arith.divf %7, %8 : vector<2x1xf32>
    %10 = vector.broadcast %9 : vector<2x1xf32> to vector<2x128xf32>
    %11 = arith.subf %5, %10 : vector<2x128xf32>
    %12 = vector.broadcast %9 : vector<2x1xf32> to vector<2x128xf32>
    %13 = arith.subf %5, %12 : vector<2x128xf32>
    %14 = arith.mulf %11, %13 : vector<2x128xf32>
    %cst_7 = arith.constant dense<0.000000e+00> : vector<2xf32>
    %15 = vector.multi_reduction <add>, %14, %cst_7 [1] : vector<2x128xf32> to vector<2xf32>
    %16 = vector.shape_cast %15 : vector<2xf32> to vector<2x1xf32>
    %cst_8 = arith.constant 1.280000e+02 : f32
    %17 = vector.broadcast %cst_8 : f32 to vector<2x1xf32>
    %18 = arith.divf %16, %17 : vector<2x1xf32>
    %19 = vector.broadcast %9 : vector<2x1xf32> to vector<2x128xf32>
    %20 = arith.subf %5, %19 : vector<2x128xf32>
    %cst_9 = arith.constant 9.99999974E-6 : f32
    %21 = vector.broadcast %cst_9 : f32 to vector<2x1xf32>
    %22 = arith.addf %18, %21 : vector<2x1xf32>
    %23 = math.rsqrt %22 : vector<2x1xf32>
    %24 = vector.broadcast %23 : vector<2x1xf32> to vector<2x128xf32>
    %25 = arith.mulf %20, %24 : vector<2x128xf32>
    %c0_10 = arith.constant 0 : index
    %c0_11 = arith.constant 0 : index
    %26 = vector.load %arg4[%c0_10, %c0_11] : memref<1x128xf32, #tpu.memory_space<vmem>>, vector<1x128xf32>
    %27 = vector.broadcast %26 : vector<1x128xf32> to vector<2x128xf32>
    %28 = arith.mulf %25, %27 : vector<2x128xf32>
    %c0_12 = arith.constant 0 : index
    %c0_13 = arith.constant 0 : index
    %29 = vector.load %arg5[%c0_12, %c0_13] : memref<1x128xf32, #tpu.memory_space<vmem>>, vector<1x128xf32>
    %30 = vector.broadcast %29 : vector<1x128xf32> to vector<2x128xf32>
    %31 = arith.addf %28, %30 : vector<2x128xf32>
    %cst_14 = arith.constant 0.000000e+00 : f32
    %32 = vector.broadcast %cst_14 : f32 to vector<2x128xf32>
    %33 = arith.maximumf %31, %32 : vector<2x128xf32>
    %c0_15 = arith.constant 0 : index
    %c0_16 = arith.constant 0 : index
    %34 = vector.load %arg6[%c0_15, %c0_16] : memref<128x4xf32, #tpu.memory_space<vmem>>, vector<128x4xf32>
    %cst_17 = arith.constant dense<0.000000e+00> : vector<2x4xf32>
    %35 = tpu.matmul %33, %34, %cst_17 {dimension_numbers = #tpu.dot_dimension_numbers<[1], [0], [0], [1], [0, 0, 1, 1], [], []>} : vector<2x128xf32>, vector<128x4xf32>, vector<2x4xf32> -> vector<2x4xf32>
    %c0_18 = arith.constant 0 : index
    %c0_19 = arith.constant 0 : index
    %36 = vector.load %arg7[%c0_18, %c0_19] : memref<1x4xf32, #tpu.memory_space<vmem>>, vector<1x4xf32>
    %37 = vector.broadcast %36 : vector<1x4xf32> to vector<2x4xf32>
    %38 = arith.addf %35, %37 : vector<2x4xf32>
    %cst_20 = arith.constant dense<0xFF800000> : vector<2xf32>
    %39 = vector.multi_reduction <maximumf>, %38, %cst_20 [1] : vector<2x4xf32> to vector<2xf32>
    %40 = vector.shape_cast %39 : vector<2xf32> to vector<2x1xf32>
    %41 = vector.broadcast %40 : vector<2x1xf32> to vector<2x4xf32>
    %42 = arith.subf %38, %41 : vector<2x4xf32>
    %43 = math.exp %42 : vector<2x4xf32>
    %cst_21 = arith.constant dense<0.000000e+00> : vector<2xf32>
    %44 = vector.multi_reduction <add>, %43, %cst_21 [1] : vector<2x4xf32> to vector<2xf32>
    %45 = vector.shape_cast %44 : vector<2xf32> to vector<2x1xf32>
    %46 = vector.broadcast %45 : vector<2x1xf32> to vector<2x4xf32>
    %47 = arith.divf %43, %46 : vector<2x4xf32>
    %c0_22 = arith.constant 0 : index
    %c0_23 = arith.constant 0 : index
    %48 = vector.load %arg8[%c0_22, %c0_23] : memref<2x4xf32, #tpu.memory_space<vmem>>, vector<2x4xf32>
    tpu.vector_store %arg8[%c0_22, %c0_23], %47 {strides = array<i32>} : memref<2x4xf32, #tpu.memory_space<vmem>>, vector<2x4xf32>,
    return
  }
  func.func @transform_0(%arg0: i32) -> (i32, i32) {
    %c0_i32 = arith.constant 0 : i32
    %c0_i32_0 = arith.constant 0 : i32
    %c0_i32_1 = arith.constant 0 : i32
    return %c0_i32, %c0_i32_0 : i32, i32
  }
  func.func @transform_1(%arg0: i32) -> (i32, i32) {
    %c0_i32 = arith.constant 0 : i32
    %c0_i32_0 = arith.constant 0 : i32
    %c0_i32_1 = arith.constant 0 : i32
    return %c0_i32, %c0_i32_0 : i32, i32
  }
  func.func @transform_2(%arg0: i32) -> (i32, i32) {
    %c0_i32 = arith.constant 0 : i32
    %c0_i32_0 = arith.constant 0 : i32
    %c0_i32_1 = arith.constant 0 : i32
    return %c0_i32, %c0_i32_0 : i32, i32
  }
  func.func @transform_3(%arg0: i32) -> (i32, i32) {
    %c0_i32 = arith.constant 0 : i32
    %c0_i32_0 = arith.constant 0 : i32
    %c0_i32_1 = arith.constant 0 : i32
    return %c0_i32, %c0_i32_0 : i32, i32
  }
  func.func @transform_4(%arg0: i32) -> (i32, i32) {
    %c0_i32 = arith.constant 0 : i32
    %c0_i32_0 = arith.constant 0 : i32
    %c0_i32_1 = arith.constant 0 : i32
    return %c0_i32, %c0_i32_0 : i32, i32
  }
  func.func @transform_5(%arg0: i32) -> (i32, i32) {
    %c0_i32 = arith.constant 0 : i32
    %c0_i32_0 = arith.constant 0 : i32
    %c0_i32_1 = arith.constant 0 : i32
    return %c0_i32, %c0_i32_0 : i32, i32
  }
  func.func @transform_6(%arg0: i32) -> (i32, i32) {
    %c0_i32 = arith.constant 0 : i32
    %c0_i32_0 = arith.constant 0 : i32
    %c0_i32_1 = arith.constant 0 : i32
    return %c0_i32, %c0_i32_0 : i32, i32
  }
  func.func @transform_7(%arg0: i32) -> (i32, i32) {
    %c0_i32 = arith.constant 0 : i32
    %c0_i32_0 = arith.constant 0 : i32
    %c0_i32_1 = arith.constant 0 : i32
    return %c0_i32, %c0_i32_0 : i32, i32
  }
}

</mosaic_0001>

<bundles_post_ra>
// kernel: tpu_custom_call.1
= control target key start
LH: loop header
LB: loop body
LE: loop exit
PB: predicated region body
PF: predicated region fallthrough
CT: control target
= control target key end

     0   :  { %v402_v3 = vmov 0.0|0.0   ;;  %vm403_vm0 = vmmov 0   ;;  %v404_v6 = vmov 0.0   ;;  %s548_s0 = inlined_call_operand.vmem [shape: f32[2,32], index: 0, kind: input, shape index: {}]   ;;  %s549_s1 = inlined_call_operand.vmem [shape: f32[32,128], index: 1, kind: input, shape index: {}]   ;;  %s550_s2 = inlined_call_operand.vmem [shape: f32[1,128], index: 2, kind: input, shape index: {}]   ;;  %s551_s3 = inlined_call_operand.vmem [shape: f32[1,128], index: 3, kind: input, shape index: {}]   ;;  %s552_s4 = inlined_call_operand.vmem [shape: f32[1,128], index: 4, kind: input, shape index: {}]   ;;  %s553_s5 = inlined_call_operand.vmem [shape: f32[128,4], index: 5, kind: input, shape index: {}]   ;;  %s554_s6 = inlined_call_operand.vmem [shape: f32[1,4], index: 6, kind: input, shape index: {}]   ;;  %s555_s7 = inlined_call_operand.hbm [shape: f32[2,4], index: 7, kind: output, shape index: {}]  }
   0x1   :  { %v28_v0 = vld [vmem:[%s549_s1] sm:$0xff]  ;;  %v29_v1 = vld [vmem:[%s549_s1 + $0x8] sm:$0xff]  ;;  %v30_v2 = vld [vmem:[%s549_s1 + $0x10] sm:$0xff]  ;;  %338 = vmatprep.subr.bf16.mxu0 %v402_v3  ;;  %300 = vmatprep.mubr.msk.f32.mxu0 %vm403_vm0, %v404_v6 }
   0x2   :  { %v339_v4 = vpack.c.bf16 %v29_v1, %v28_v0  ;;  %v31_v5 = vld [vmem:[%s549_s1 + $0x18] sm:$0xff]  ;;  %344 = vmatprep.subr.bf16.mxu1 %v402_v3  ;;  %335 = vmatprep.mubr.msk.f32.mxu1 %vm403_vm0, %v404_v6 }
   0x3   :  { %12 = vsyncpa [#allocation3], 0  ;;  %v342_v7 = vpack.c.bf16 %v31_v5, %v30_v2  ;;  %v27_v8 = vld [vmem:[%s548_s0] sm:$0x3]  ;;  %vm39_vm1 = vcmask 261120   ;;  %vm113_vm2 = vcmask 1041408  }
   0x4   :  { %340 = vmatpush3.bf16.msra.mxu0 %v339_v4  ;;  %v265_v9 = vld [vmem:[%s550_s2] ss:$0 sm:$0xff]  ;;  %v146_v15 = vld [vmem:[%s553_s5 + $0x8] sm:$0xff]  ;;  %v147_v16 = vld [vmem:[%s553_s5 + $0x10] sm:$0xff]  ;;  %vm238_vm3 = vcmask 25600  }
   0x5   :  { %341 = vmatprep.subr.bf16.mxu0 %v402_v3  ;;  %v145_v14 = vld [vmem:[%s553_s5] sm:$0xff]  ;;  %v148_v18 = vld [vmem:[%s553_s5 + $0x18] sm:$0xff]  ;;  %v150_v26 = vld [vmem:[%s553_s5 + $0x28] sm:$0xff] }
   0x6   :  { %v345_v17 = vpack.c.bf16 %v146_v15, %v145_v14  ;;  %v348_v19 = vpack.c.bf16 %v148_v18, %v147_v16  ;;  %v149_v25 = vld [vmem:[%s553_s5 + $0x20] sm:$0xff]  ;;  %v151_v28 = vld [vmem:[%s553_s5 + $0x30] sm:$0xff]  ;;  %v152_v29 = vld [vmem:[%s553_s5 + $0x38] sm:$0xff] }
   0x7   :  { %v351_v27 = vpack.c.bf16 %v150_v26, %v149_v25  ;;  %v354_v30 = vpack.c.bf16 %v152_v29, %v151_v28  ;;  %v153_v31 = vld [vmem:[%s553_s5 + $0x40] sm:$0xff]  ;;  %v154_v32 = vld [vmem:[%s553_s5 + $0x48] sm:$0xff]  ;;  %v155_v34 = vld [vmem:[%s553_s5 + $0x50] sm:$0xff] }
   0x8   :  { %343 = vmatpush3.bf16.msra.mxu0 %v342_v7  ;;  %346 = vmatpush3.bf16.msra.mxu1 %v345_v17  ;;  %v357_v33 = vpack.c.bf16 %v154_v32, %v153_v31  ;;  %v156_v35 = vld [vmem:[%s553_s5 + $0x58] sm:$0xff]  ;;  %v157_v37 = vld [vmem:[%s553_s5 + $0x60] sm:$0xff]  ;;  %v158_v38 = vld [vmem:[%s553_s5 + $0x68] sm:$0xff] }
   0x9   :  { %347 = vmatprep.subr.bf16.mxu1 %v402_v3  ;;  %v360_v36 = vpack.c.bf16 %v156_v35, %v155_v34  ;;  %v363_v39 = vpack.c.bf16 %v158_v38, %v157_v37  ;;  %v159_v40 = vld [vmem:[%s553_s5 + $0x70] sm:$0xff]  ;;  %v160_v41 = vld [vmem:[%s553_s5 + $0x78] sm:$0xff]  ;;  %v267_v47 = vld [vmem:[%s551_s3] ss:$0 sm:$0xff]  ;;  %s405_s3 = smov [#allocation2]  }
   0xa   :  { %v366_v42 = vpack.c.bf16 %v160_v41, %v159_v40  ;;  %v268_v49 = vld [vmem:[%s552_s4] ss:$0 sm:$0xff]  ;;  %s257_s4 = sshll.u32 %s405_s3, 4  ;;  %s258_s4 = int_to_ptr.vmem [resolvable:$true] %s257_s4 }
   0xb   :  { %301 = vmatmul.mubr.msk.f32.vlgmr.msra.gmra.mrb[0].mxu0 %vm39_vm1, %v27_v8  ;;  %v269_v53 = vld [vmem:[%s554_s6] ss:$0 sm:$0xff]  ;;  %s378_s6 = scalar_lea.vmem %s258_s4, 32  ;;  %p383_p1 = scmp.lt.s32.totalorder %s258_s4, %s258_s4 }
   0xc   :  { %349 = vmatpush3.bf16.msra.mxu1 %v348_v19  ;;  %p379_p0 = scmp.ne.s32.totalorder %s258_s4, %s378_s6  ;;  %p384_p2 = scmp.lt.s32.totalorder %s378_s6, %s378_s6 }
   0xd   :  { %350 = vmatprep.subr.bf16.mxu1 %v402_v3 }
   0xe   :  { %p385_p3 = por %p384_p2, %p383_p1 }
  0x10   :  { %352 = vmatpush3.bf16.msra.mxu1 %v351_v27  ;;  %p386_p4 = pnand %p385_p3, %p379_p0 }
  0x11   :  { %353 = vmatprep.subr.bf16.mxu1 %v402_v3 }
  0x14   :  { %355 = vmatpush3.bf16.msra.mxu1 %v354_v30 }
  0x15   :  { %356 = vmatprep.subr.bf16.mxu1 %v402_v3 }
  0x18   :  { %358 = vmatpush3.bf16.msra.mxu1 %v357_v33 }
  0x19   :  { %359 = vmatprep.subr.bf16.mxu1 %v402_v3 }
  0x1c   :  { %361 = vmatpush3.bf16.msra.mxu1 %v360_v36 }
  0x1d   :  { %362 = vmatprep.subr.bf16.mxu1 %v402_v3 }
  0x20   :  { %364 = vmatpush3.bf16.msra.mxu1 %v363_v39 }
  0x21   :  { %365 = vmatprep.subr.bf16.mxu1 %v402_v3 }
  0x24   :  { %367 = vmatpush3.bf16.msra.mxu1 %v366_v42 }
  0xde   :  { %v109_v10 = vpop.f32.mrb[0].mxu0 }
  0xdf   :  { %v110_v11 = vadd.f32 %v265_v9, %v109_v10  ;;  %v302_v12 = vpop.f32.mrb[1].mxu0 }
  0xe1   :  { %v114_v13 = vsel %vm113_vm2, %v110_v11, 0.0 }
  0xe2   :  { %115 = vadd.xlane.f32.xlu0 %v114_v13 }
 0x16f   :  { %v116_v20 = vpop.xlane.xlu0 %115 }
 0x170   :  { %v118_v21 = vmul.f32 0.0078125, %v116_v20 }
 0x172   :  { %v119_v22 = vsub.f32 %v110_v11, %v118_v21 }
 0x174   :  { %v120_v23 = vmul.f32 %v119_v22, %v119_v22 }
 0x176   :  { %v121_v24 = vsel %vm113_vm2, %v120_v23, 0.0 }
 0x177   :  { %122 = vadd.xlane.f32.xlu0 %v121_v24 }
 0x204   :  { %v123_v43 = vpop.xlane.xlu0 %122 }
 0x205   :  { %v124_v44 = vmul.f32 0.0078125, %v123_v43 }
 0x207   :  { %v125_v45 = vadd.f32 1e-05, %v124_v44 }
 0x209   :  { %372 = vrsqrt.f32 %v125_v45 }
 0x213   :  { %v373_v46 = vpop.eup %372 }
 0x214   :  { %v127_v48 = vmul.f32 %v373_v46, %v119_v22 }
 0x216   :  { %v135_v50 = vmul.f32 %v267_v47, %v127_v48 }
 0x218   :  { %v143_v51 = vadd.f32 %v268_v49, %v135_v50 }
 0x21a   :  { %v144_v52 = vmax.f32 %v143_v51, 0.0 }
 0x21c   :  { %336 = vmatmul.mubr.f32.vlgmr.msra.gmra.mrb[0].mxu1 %v144_v52 }
 0x2ef   :  { %v234_v54 = vpop.f32.mrb[0].mxu1 }
 0x2f0   :  { %v235_v55 = vadd.f32 %v269_v53, %v234_v54  ;;  %v337_v56 = vpop.f32.mrb[1].mxu1 }
 0x2f2   :  { %v239_v57 = vsel %vm238_vm3, %v235_v55, -inf }
 0x2f3   :  { %240 = vmax.xlane.f32.xlu1 %v239_v57 }
 0x380   :  { %v241_v58 = vpop.xlane.xlu1 %240 }
 0x381   :  { %v242_v59 = vsub.f32 %v235_v55, %v241_v58 }
 0x383   :  { %v243_v60 = vmul.f32 1.442695, %v242_v59 }
 0x385   :  { %374 = vpow2.f32 %v243_v60 }
 0x38f   :  { %v375_v61 = vpop.eup %374 }
 0x390   :  { %v245_v62 = vsel %vm238_vm3, %v375_v61, 0.0 }
 0x391   :  { %246 = vadd.xlane.f32.xlu1 %v245_v62 }
 0x41e   :  { %v247_v63 = vpop.xlane.xlu1 %246 }
 0x41f   :  { %376 = vrcp.f32 %v247_v63 }
 0x429   :  { %v377_v0 = vpop.eup %376 }
 0x42a   :  { %v249_v1 = vmul.f32 %v377_v0, %v375_v61 }
 0x42c   :  { %250 = vst.msk [vmem:[#allocation2] sm:$0x3] %vm238_vm3, %v249_v1 }
 0x42d   :  { %389 = shalt.err (!%p386_p4)
}
 0x42e   :  { %s390_s23 = scalar_lea.hbm %s555_s7, 32 }
 0x42f   :  { %p391_p5 = scmp.ne.s32.totalorder %s555_s7, %s390_s23  ;;  %p394_p6 = scmp.lt.u32.totalorder %s390_s23, %s555_s7 }
 0x431   :  { %p396_p7 = pnand %p394_p6, %p391_p5 }
 0x433   :  { %399 = shalt.err (!%p396_p7)
}
 0x434   :  { %260 = dma.vmem_to_hbm [thread:$0]  %s258_s4, 32, %s555_s7, [#allocation3]  }
 0x435   :  { %400 = dma.done.wait [#allocation3], 32  }
 0x436   :  { %401 = vsyncadd [#allocation3], 4294967264 }
 0x437   :  { %264 = vsyncpa [#allocation3], 1 }

</bundles_post_ra>
